<compile_context>
chip_gen: v6e
topology: v6e:2x2x1
jax: 0.10.0
libtpu: 0.0.40
codegen_flags: <defaults>
</compile_context>

<pallas_src>
import jax
import jax.numpy as jnp
from jax.experimental import pallas as pl
from jax.experimental.pallas import tpu as pltpu

# Hyperparameters (spec values; kernel_size forced equal to input_size, see note).
BATCH            = 8
INPUT_SIZE       = 21
CNN_KERNEL_SIZE  = 21     # must equal INPUT_SIZE for the PyTorch forward to type-check
CNN_OUT_CHANNELS = 32
LSTM_HIDDEN      = 64
LSTM_NUM_LAYERS  = 2      # two explicit cell applications below
OUTPUT_SIZE      = 1


def _round_up(n, m):
    return (n + m - 1) // m * m


_F_PAD   = _round_up(INPUT_SIZE, 8)      # 24: keeps packed-row offsets sublane aligned
_OUT_PAD = 128                           # lane-dense output width
_ROWS_A  = _F_PAD + LSTM_HIDDEN + 8      # [W0 | W1 | bias block], width 4H
_ROWS_B  = LSTM_HIDDEN + _F_PAD + 8      # [Wh_out | Wx_out | bias block], width 128


def lstm_cnn_kernel(x_ref, wa_ref, wb_ref, out_ref):
    H, FP = LSTM_HIDDEN, _F_PAD
    x = x_ref[...]                                      # (Bt, FP) f32

    # Static, sublane-aligned views into the two packed parameter arrays.
    w0 = wa_ref[0:FP, :]                                # (FP, 4H)  x -> gates, layer 0
    w1 = wa_ref[FP:FP + H, :]                           # (H, 4H)   h1 -> gates, layer 1
    b0 = wa_ref[FP + H:FP + H + 1, :]                   # (1, 4H)   b_ih_l0 + b_hh_l0
    b1 = wa_ref[FP + H + 1:FP + H + 2, :]               # (1, 4H)   b_ih_l1 + b_hh_l1
    wh = wb_ref[0:H, :]                                 # (H, 128)  fc rows for h2 (padded)
    wx = wb_ref[H:H + FP, :]                            # (FP, 128) fused conv->fc (padded)
    bo = wb_ref[H + FP:H + FP + 1, :]                   # (1, 128)  b_conv@fc_c + b_fc (padded)

    def cell(inp, w, b):
        # One timestep, zero initial (h, c): the h_prev matmul, the f-gate and
        # the f*c_prev term are exact no-ops and have been removed.
        gates = jnp.dot(inp, w, preferred_element_type=jnp.float32) + b   # (Bt, 4H)
        i = jax.nn.sigmoid(gates[:, 0 * H:1 * H])       # PyTorch gate order i,f,g,o
        g = jnp.tanh(      gates[:, 2 * H:3 * H])
        o = jax.nn.sigmoid(gates[:, 3 * H:4 * H])
        return o * jnp.tanh(i * g)

    h1 = cell(x, w0, b0)
    h2 = cell(h1, w1, b1)                               # == lstm_out[:, -1, :] (seq_len == 1)

    # combined @ Wfc.T + b_fc with the conv branch folded in:
    #   fc(h2, conv) = h2 @ Wfc_h + x @ (Wconv.T @ Wfc_c) + (b_conv @ Wfc_c + b_fc)
    out = (jnp.dot(h2, wh, preferred_element_type=jnp.float32)
           + jnp.dot(x, wx, preferred_element_type=jnp.float32)
           + bo)                                        # (Bt, 128); column 0 is the result
    out_ref[...] = out                                  # full-tile, lane-dense store


def pack_params(params):
    """One-time host-side folding + packing of the PyTorch parameters."""
    assert CNN_KERNEL_SIZE == INPUT_SIZE, (
        "LSTM_CNN_Model.forward only type-checks when Conv1d output length == 1 "
        "(cnn_kernel_size must equal input_size)")
    H, F, OC, O = LSTM_HIDDEN, INPUT_SIZE, CNN_OUT_CHANNELS, OUTPUT_SIZE
    FP = _F_PAD
    f32 = jnp.float32
    hi = jax.lax.Precision.HIGHEST

    # --- packed array A: LSTM input->gate weights + fused biases (width 4H) ---
    w0 = jnp.zeros((FP, 4 * H), f32).at[:F, :].set(params["w_ih_l0"].T.astype(f32))
    w1 = params["w_ih_l1"].T.astype(f32)                            # (H, 4H)
    bias_a = jnp.zeros((8, 4 * H), f32)
    bias_a = bias_a.at[0, :].set((params["b_ih_l0"] + params["b_hh_l0"]).astype(f32))
    bias_a = bias_a.at[1, :].set((params["b_ih_l1"] + params["b_hh_l1"]).astype(f32))
    packed_a = jnp.concatenate([w0, w1, bias_a], axis=0)            # (_ROWS_A, 4H)

    # --- packed array B: output head (concat + conv + fc folded, width 128) ---
    wfc_t = params["w_fc"].T.astype(f32)                            # (H+OC, O)
    wfc_h, wfc_c = wfc_t[:H, :], wfc_t[H:, :]
    wconv_t = params["w_conv"].reshape(OC, F).T.astype(f32)         # (F, OC)
    wx = jnp.dot(wconv_t, wfc_c, precision=hi)                      # (F, O)
    b_out = (jnp.dot(params["b_conv"].astype(f32), wfc_c, precision=hi)
             + params["b_fc"].astype(f32))                          # (O,)

    wh_pad = jnp.zeros((H, _OUT_PAD), f32).at[:, :O].set(wfc_h)
    wx_pad = jnp.zeros((FP, _OUT_PAD), f32).at[:F, :O].set(wx)
    bias_b = jnp.zeros((8, _OUT_PAD), f32).at[0, :O].set(b_out)
    packed_b = jnp.concatenate([wh_pad, wx_pad, bias_b], axis=0)    # (_ROWS_B, 128)
    return packed_a, packed_b


@jax.jit
def lstm_cnn_forward(x_ncl, packed_a, packed_b):
    """x_ncl: (B, 1, INPUT_SIZE) float32 -> (B, OUTPUT_SIZE) float32."""
    B = x_ncl.shape[0]
    x2 = x_ncl.reshape(B, INPUT_SIZE).astype(jnp.float32)

    # Batch tiling: one padded tile at small B; 256-row tiles (fills a v6e/v7x
    # MXU pass, multiple of v5e's 128) when B is large, pipelined over the grid.
    bt = 256 if B >= 256 else _round_up(B, 8)
    b_pad = _round_up(B, bt)
    x_pad = jnp.zeros((b_pad, _F_PAD), jnp.float32).at[:B, :INPUT_SIZE].set(x2)

    out = pl.pallas_call(
        lstm_cnn_kernel,
        out_shape=jax.ShapeDtypeStruct((b_pad, _OUT_PAD), jnp.float32),
        grid_spec=pltpu.PrefetchScalarGridSpec(
            num_scalar_prefetch=0,
            grid=(b_pad // bt,),
            in_specs=[
                pl.BlockSpec((bt, _F_PAD), lambda i: (i, 0)),
                # weights: whole-array blocks, constant index_map -> VMEM resident
                pl.BlockSpec((_ROWS_A, 4 * LSTM_HIDDEN), lambda i: (0, 0)),
                pl.BlockSpec((_ROWS_B, _OUT_PAD), lambda i: (0, 0)),
            ],
            out_specs=pl.BlockSpec((bt, _OUT_PAD), lambda i: (i, 0)),
        ),
        compiler_params=pltpu.CompilerParams(
            dimension_semantics=("parallel",)),   # batch axis shardable across v7x cores
    )(x_pad, packed_a, packed_b)
    return out[:B, :OUTPUT_SIZE]


def reference_forward(x_ncl, params):
    """Pure-JAX reference, literal PyTorch math (zero initial LSTM state)."""
    H = LSTM_HIDDEN
    hi = jax.lax.Precision.HIGHEST
    B = x_ncl.shape[0]
    x = x_ncl.reshape(B, INPUT_SIZE).astype(jnp.float32)

    def cell(inp, w_ih, w_hh, b_ih, b_hh):
        h_prev = jnp.zeros((B, H), jnp.float32)
        c_prev = jnp.zeros((B, H), jnp.float32)
        gates = (jnp.dot(inp, w_ih.T, precision=hi)
                 + jnp.dot(h_prev, w_hh.T, precision=hi) + b_ih + b_hh)
        i = jax.nn.sigmoid(gates[:, 0 * H:1 * H])
        f = jax.nn.sigmoid(gates[:, 1 * H:2 * H])
        g = jnp.tanh(      gates[:, 2 * H:3 * H])
        o = jax.nn.sigmoid(gates[:, 3 * H:4 * H])
        c = f * c_prev + i * g
        return o * jnp.tanh(c)

    h1 = cell(x,  params["w_ih_l0"], params["w_hh_l0"], params["b_ih_l0"], params["b_hh_l0"])
    h2 = cell(h1, params["w_ih_l1"], params["w_hh_l1"], params["b_ih_l1"], params["b_hh_l1"])
    wc = params["w_conv"].reshape(CNN_OUT_CHANNELS, CNN_KERNEL_SIZE)
    conv = jnp.dot(x, wc.T, precision=hi) + params["b_conv"][None, :]
    comb = jnp.concatenate([h2, conv], axis=1)
    return jnp.dot(comb, params["w_fc"].T, precision=hi) + params["b_fc"][None, :]


if __name__ == "__main__":
    key = jax.random.PRNGKey(0)
    ks = jax.random.split(key, 16)
    H, F = LSTM_HIDDEN, INPUT_SIZE

    def u(k, shape, fan):
        bound = 1.0 / float(fan) ** 0.5
        return jax.random.uniform(k, shape, jnp.float32, -bound, bound)

    params = {
        "w_ih_l0": u(ks[0], (4 * H, F), H),
        "w_hh_l0": u(ks[1], (4 * H, H), H),   # dead at seq_len==1 / zero init state (kept for parity)
        "b_ih_l0": u(ks[2], (4 * H,), H),
        "b_hh_l0": u(ks[3], (4 * H,), H),
        "w_ih_l1": u(ks[4], (4 * H, H), H),
        "w_hh_l1": u(ks[5], (4 * H, H), H),   # dead, kept for parity
        "b_ih_l1": u(ks[6], (4 * H,), H),
        "b_hh_l1": u(ks[7], (4 * H,), H),
        "w_conv":  u(ks[8], (CNN_OUT_CHANNELS, 1, CNN_KERNEL_SIZE), CNN_KERNEL_SIZE),
        "b_conv":  u(ks[9], (CNN_OUT_CHANNELS,), CNN_KERNEL_SIZE),
        "w_fc":    u(ks[10], (OUTPUT_SIZE, H + CNN_OUT_CHANNELS), H + CNN_OUT_CHANNELS),
        "b_fc":    u(ks[11], (OUTPUT_SIZE,), H + CNN_OUT_CHANNELS),
    }
    x = jax.random.normal(ks[12], (BATCH, 1, INPUT_SIZE), jnp.float32)

    packed_a, packed_b = pack_params(params)      # one-time param prep (hoisted out of the call)
    out = jax.block_until_ready(lstm_cnn_forward(x, packed_a, packed_b))
    ref = jax.block_until_ready(reference_forward(x, params))
    assert out.shape == (BATCH, OUTPUT_SIZE)
    assert jnp.allclose(out, ref, rtol=1e-4, atol=1e-4), (out, ref)
    print("KERNEL_OK")
</pallas_src>

<mosaic_0001>
module attributes {stable_mosaic.version = 11 : i64} {
  func.func @lstm_cnn_kernel(%arg0: i32, %arg1: memref<8x24xf32, #tpu.memory_space<vmem>>, %arg2: memref<96x256xf32, #tpu.memory_space<vmem>>, %arg3: memref<96x128xf32, #tpu.memory_space<vmem>>, %arg4: memref<8x128xf32, #tpu.memory_space<vmem>>) attributes {dimension_semantics = [#tpu.dimension_semantics<parallel>], iteration_bounds = array<i64: 1>, scalar_prefetch = 0 : i64, scratch_operands = 0 : i64, tpu.core_type = #tpu.core_type<tc>, window_params = [{transform_indices = @transform_0, window_bounds = array<i64: 8, 24>}, {pipeline_mode = #tpu.pipeline_mode<synchronous>, transform_indices = @transform_1, window_bounds = array<i64: 96, 256>}, {pipeline_mode = #tpu.pipeline_mode<synchronous>, transform_indices = @transform_2, window_bounds = array<i64: 96, 128>}, {transform_indices = @transform_3, window_bounds = array<i64: 8, 128>}]} {
    %c0 = arith.constant 0 : index
    %c0_0 = arith.constant 0 : index
    %0 = vector.load %arg1[%c0, %c0_0] : memref<8x24xf32, #tpu.memory_space<vmem>>, vector<8x24xf32>
    %c0_1 = arith.constant 0 : index
    %c0_2 = arith.constant 0 : index
    %1 = vector.load %arg2[%c0_1, %c0_2] : memref<96x256xf32, #tpu.memory_space<vmem>>, vector<24x256xf32>
    %c24 = arith.constant 24 : index
    %c0_3 = arith.constant 0 : index
    %2 = vector.load %arg2[%c24, %c0_3] : memref<96x256xf32, #tpu.memory_space<vmem>>, vector<64x256xf32>
    %c88 = arith.constant 88 : index
    %c0_4 = arith.constant 0 : index
    %3 = vector.load %arg2[%c88, %c0_4] : memref<96x256xf32, #tpu.memory_space<vmem>>, vector<1x256xf32>
    %c89 = arith.constant 89 : index
    %c0_5 = arith.constant 0 : index
    %4 = vector.load %arg2[%c89, %c0_5] : memref<96x256xf32, #tpu.memory_space<vmem>>, vector<1x256xf32>
    %c0_6 = arith.constant 0 : index
    %c0_7 = arith.constant 0 : index
    %5 = vector.load %arg3[%c0_6, %c0_7] : memref<96x128xf32, #tpu.memory_space<vmem>>, vector<64x128xf32>
    %c64 = arith.constant 64 : index
    %c0_8 = arith.constant 0 : index
    %6 = vector.load %arg3[%c64, %c0_8] : memref<96x128xf32, #tpu.memory_space<vmem>>, vector<24x128xf32>
    %c88_9 = arith.constant 88 : index
    %c0_10 = arith.constant 0 : index
    %7 = vector.load %arg3[%c88_9, %c0_10] : memref<96x128xf32, #tpu.memory_space<vmem>>, vector<1x128xf32>
    %cst = arith.constant dense<0.000000e+00> : vector<8x256xf32>
    %8 = tpu.matmul %0, %1, %cst {dimension_numbers = #tpu.dot_dimension_numbers<[1], [0], [0], [1], [0, 0, 1, 1], [], []>} : vector<8x24xf32>, vector<24x256xf32>, vector<8x256xf32> -> vector<8x256xf32>
    %9 = vector.broadcast %3 : vector<1x256xf32> to vector<8x256xf32>
    %10 = arith.addf %8, %9 : vector<8x256xf32>
    %11 = vector.extract_strided_slice %10 {offsets = [0, 0], sizes = [8, 64], strides = [1, 1]} : vector<8x256xf32> to vector<8x64xf32>
    %12 = arith.negf %11 : vector<8x64xf32>
    %13 = math.exp %12 : vector<8x64xf32>
    %cst_11 = arith.constant 1.000000e+00 : f32
    %14 = vector.broadcast %cst_11 : f32 to vector<8x64xf32>
    %15 = arith.addf %14, %13 : vector<8x64xf32>
    %16 = arith.divf %14, %15 : vector<8x64xf32>
    %17 = vector.extract_strided_slice %10 {offsets = [0, 128], sizes = [8, 64], strides = [1, 1]} : vector<8x256xf32> to vector<8x64xf32>
    %18 = math.tanh %17 : vector<8x64xf32>
    %19 = vector.extract_strided_slice %10 {offsets = [0, 192], sizes = [8, 64], strides = [1, 1]} : vector<8x256xf32> to vector<8x64xf32>
    %20 = arith.negf %19 : vector<8x64xf32>
    %21 = math.exp %20 : vector<8x64xf32>
    %cst_12 = arith.constant 1.000000e+00 : f32
    %22 = vector.broadcast %cst_12 : f32 to vector<8x64xf32>
    %23 = arith.addf %22, %21 : vector<8x64xf32>
    %24 = arith.divf %22, %23 : vector<8x64xf32>
    %25 = arith.mulf %16, %18 : vector<8x64xf32>
    %26 = math.tanh %25 : vector<8x64xf32>
    %27 = arith.mulf %24, %26 : vector<8x64xf32>
    %cst_13 = arith.constant dense<0.000000e+00> : vector<8x256xf32>
    %28 = tpu.matmul %27, %2, %cst_13 {dimension_numbers = #tpu.dot_dimension_numbers<[1], [0], [0], [1], [0, 0, 1, 1], [], []>} : vector<8x64xf32>, vector<64x256xf32>, vector<8x256xf32> -> vector<8x256xf32>
    %29 = vector.broadcast %4 : vector<1x256xf32> to vector<8x256xf32>
    %30 = arith.addf %28, %29 : vector<8x256xf32>
    %31 = vector.extract_strided_slice %30 {offsets = [0, 0], sizes = [8, 64], strides = [1, 1]} : vector<8x256xf32> to vector<8x64xf32>
    %32 = arith.negf %31 : vector<8x64xf32>
    %33 = math.exp %32 : vector<8x64xf32>
    %cst_14 = arith.constant 1.000000e+00 : f32
    %34 = vector.broadcast %cst_14 : f32 to vector<8x64xf32>
    %35 = arith.addf %34, %33 : vector<8x64xf32>
    %36 = arith.divf %34, %35 : vector<8x64xf32>
    %37 = vector.extract_strided_slice %30 {offsets = [0, 128], sizes = [8, 64], strides = [1, 1]} : vector<8x256xf32> to vector<8x64xf32>
    %38 = math.tanh %37 : vector<8x64xf32>
    %39 = vector.extract_strided_slice %30 {offsets = [0, 192], sizes = [8, 64], strides = [1, 1]} : vector<8x256xf32> to vector<8x64xf32>
    %40 = arith.negf %39 : vector<8x64xf32>
    %41 = math.exp %40 : vector<8x64xf32>
    %cst_15 = arith.constant 1.000000e+00 : f32
    %42 = vector.broadcast %cst_15 : f32 to vector<8x64xf32>
    %43 = arith.addf %42, %41 : vector<8x64xf32>
    %44 = arith.divf %42, %43 : vector<8x64xf32>
    %45 = arith.mulf %36, %38 : vector<8x64xf32>
    %46 = math.tanh %45 : vector<8x64xf32>
    %47 = arith.mulf %44, %46 : vector<8x64xf32>
    %cst_16 = arith.constant dense<0.000000e+00> : vector<8x128xf32>
    %48 = tpu.matmul %47, %5, %cst_16 {dimension_numbers = #tpu.dot_dimension_numbers<[1], [0], [0], [1], [0, 0, 1, 1], [], []>} : vector<8x64xf32>, vector<64x128xf32>, vector<8x128xf32> -> vector<8x128xf32>
    %cst_17 = arith.constant dense<0.000000e+00> : vector<8x128xf32>
    %49 = tpu.matmul %0, %6, %cst_17 {dimension_numbers = #tpu.dot_dimension_numbers<[1], [0], [0], [1], [0, 0, 1, 1], [], []>} : vector<8x24xf32>, vector<24x128xf32>, vector<8x128xf32> -> vector<8x128xf32>
    %50 = arith.addf %48, %49 : vector<8x128xf32>
    %51 = vector.broadcast %7 : vector<1x128xf32> to vector<8x128xf32>
    %52 = arith.addf %50, %51 : vector<8x128xf32>
    %c0_18 = arith.constant 0 : index
    %c0_19 = arith.constant 0 : index
    %53 = vector.load %arg4[%c0_18, %c0_19] : memref<8x128xf32, #tpu.memory_space<vmem>>, vector<8x128xf32>
    tpu.vector_store %arg4[%c0_18, %c0_19], %52 {strides = array<i32>} : memref<8x128xf32, #tpu.memory_space<vmem>>, vector<8x128xf32>,
    return
  }
  func.func @transform_0(%arg0: i32) -> (i32, i32) {
    %c0_i32 = arith.constant 0 : i32
    %c0_i32_0 = arith.constant 0 : i32
    return %arg0, %c0_i32 : i32, i32
  }
  func.func @transform_1(%arg0: i32) -> (i32, i32) {
    %c0_i32 = arith.constant 0 : i32
    %c0_i32_0 = arith.constant 0 : i32
    %c0_i32_1 = arith.constant 0 : i32
    return %c0_i32, %c0_i32_0 : i32, i32
  }
  func.func @transform_2(%arg0: i32) -> (i32, i32) {
    %c0_i32 = arith.constant 0 : i32
    %c0_i32_0 = arith.constant 0 : i32
    %c0_i32_1 = arith.constant 0 : i32
    return %c0_i32, %c0_i32_0 : i32, i32
  }
  func.func @transform_3(%arg0: i32) -> (i32, i32) {
    %c0_i32 = arith.constant 0 : i32
    %c0_i32_0 = arith.constant 0 : i32
    return %arg0, %c0_i32 : i32, i32
  }
}

</mosaic_0001>

<bundles_post_ra>
// kernel: lstm_cnn_forward.1
= control target key start
LH: loop header
LB: loop body
LE: loop exit
PB: predicated region body
PF: predicated region fallthrough
CT: control target
= control target key end

     0   :  { %8 = vsyncpa [#allocation3], 0  ;;  %s659_s0 = inlined_call_operand.vmem [shape: f32[8,24], index: 0, kind: input, shape index: {}]   ;;  %s660_s1 = inlined_call_operand.hbm [shape: f32[96,256], index: 1, kind: input, shape index: {}]   ;;  %s661_s2 = inlined_call_operand.hbm [shape: f32[96,128], index: 2, kind: input, shape index: {}]   ;;  %s662_s3 = inlined_call_operand.vmem [shape: f32[8,128], index: 3, kind: output, shape index: {}]  }
   0x1   :  { %9 = vsyncpa [#allocation5], 0  ;;  %s579_s12 = smov [#allocation2]  }
   0x2   :  { %s17_s13 = sshll.u32 %s579_s12, 4  ;;  %s18_s13 = int_to_ptr.vmem [resolvable:$true] %s17_s13 }
   0x3   :  { %s543_s14 = scalar_lea.vmem %s18_s13, 3072  ;;  %p548_p1 = scmp.lt.s32.totalorder %s18_s13, %s18_s13 }
   0x4   :  { %p544_p0 = scmp.ne.s32.totalorder %s18_s13, %s543_s14  ;;  %p549_p2 = scmp.lt.s32.totalorder %s543_s14, %s543_s14 }
   0x6   :  { %p550_p3 = por %p549_p2, %p548_p1 }
   0x8   :  { %p551_p4 = pnand %p550_p3, %p544_p0 }
   0xa   :  { %554 = shalt.err (!%p551_p4)
}
   0xb   :  { %s580_s15 = smov 256   ;;  %s581_s16 = smov 16  }
   0xc   :  { %23 = dma.hbm_to_vmem [thread:$0]  %s660_s1, 3072, %s18_s13, [#allocation3], %s580_s15, %s580_s15, %s581_s16  }
   0xd   :  { %s582_s19 = smov [#allocation4]  }
   0xe   :  { %s29_s20 = sshll.u32 %s582_s19, 4  ;;  %s30_s20 = int_to_ptr.vmem [resolvable:$true] %s29_s20 }
   0xf   :  { %s563_s21 = scalar_lea.vmem %s30_s20, 1536  ;;  %p568_p6 = scmp.lt.s32.totalorder %s30_s20, %s30_s20 }
  0x10   :  { %p564_p5 = scmp.ne.s32.totalorder %s30_s20, %s563_s21  ;;  %p569_p7 = scmp.lt.s32.totalorder %s563_s21, %s563_s21 }
  0x12   :  { %p570_p8 = por %p569_p7, %p568_p6 }
  0x14   :  { %p571_p9 = pnand %p570_p8, %p564_p5 }
  0x16   :  { %574 = shalt.err (!%p571_p9)
}
  0x17   :  { %s583_s22 = smov 128   ;;  %s584_s23 = smov 8  }
  0x18   :  { %35 = dma.hbm_to_vmem [thread:$0]  %s661_s2, 1536, %s30_s20, [#allocation5], %s583_s22, %s583_s22, %s584_s23  }
  0x19   :  { %575 = dma.done.wait [#allocation3], 3072  }
  0x1a   :  { %576 = vsyncadd [#allocation3], 4294964224 }
  0x1b   :  { %577 = dma.done.wait [#allocation5], 1536  }
  0x1c   :  { %578 = vsyncadd [#allocation5], 4294965760  ;;  %v585_v0 = vmov 0.0   ;;  %v48_v1 = vld [vmem:[#allocation2 + $0x28] sm:$0xff]  ;;  %v47_v2 = vld [vmem:[#allocation2 + $0x20] sm:$0xff]  ;;  %vm92_vm0 = vcmask 195584   ;;  %v82_v8 = vlaneseq }
  0x1d   :  { %160 = vmatprep.mubr.f32.mxu1 %v585_v0  ;;  %474 = vmatprep.subr.mxu0 %v585_v0  ;;  %v46_v3 = vld [vmem:[#allocation2 + $0x18] sm:$0xff]  ;;  %v45_v4 = vld [vmem:[#allocation2 + $0x10] sm:$0xff]  ;;  %v44_v5 = vld [vmem:[#allocation2 + $0x8] sm:$0xff]  ;;  %vm201_vm1 = vcmask 523264   ;;  %vm587_vm2 = vmmov 0  }
  0x1e   :  { %122 = vmatprep.subr.mxu1 %v48_v1  ;;  %v43_v6 = vld [vmem:[#allocation2] sm:$0xff]  ;;  %v624_v9 = vshrl.u32 %v82_v8, 7  ;;  %v66_v11 = vld [vmem:[#allocation2 + $0xb0] ss:$8 sm:$0x3]  ;;  %v64_v25 = vld [vmem:[#allocation2 + $0xa8] sm:$0xff]  ;;  %480 = vmatprep.mubr.msk.f32.mxu0 %vm587_vm2, %v585_v0 }
  0x1f   :  { %123 = vmatpush1.msra.mxu1 %v47_v2  ;;  %v619_v7 = vld [vmem:[%s659_s0] sm:$0xff]  ;;  %v62_v27 = vld [vmem:[#allocation2 + $0x98] sm:$0xff]  ;;  %v61_v28 = vld [vmem:[#allocation2 + $0x90] sm:$0xff]  ;;  %s586_s0 = smov 64  }
  0x20   :  { %124 = vmatprep.subr.mxu1 %v46_v3  ;;  %v84_v10 = vsub.s32 0, %v624_v9  ;;  %v88_v16 = vsub.s32 1, %v624_v9  ;;  %v63_v26 = vld [vmem:[#allocation2 + $0xa0] sm:$0xff]  ;;  %v60_v29 = vld [vmem:[#allocation2 + $0x88] sm:$0xff]  ;;  %v58_v31 = vld [vmem:[#allocation2 + $0x78] sm:$0xff] }
  0x21   :  { %125 = vmatpush1.msra.mxu1 %v45_v4  ;;  %v59_v30 = vld [vmem:[#allocation2 + $0x80] sm:$0xff]  ;;  %v57_v32 = vld [vmem:[#allocation2 + $0x70] sm:$0xff]  ;;  %v56_v33 = vld [vmem:[#allocation2 + $0x68] sm:$0xff] }
  0x22   :  { %126 = vmatprep.subr.mxu1 %v44_v5  ;;  %v85_v12 = vrot.slane %v66_v11, %v84_v10  ;;  %v89_v17 = vrot.slane %v66_v11, %v88_v16  ;;  %v55_v34 = vld [vmem:[#allocation2 + $0x60] sm:$0xff]  ;;  %v54_v35 = vld [vmem:[#allocation2 + $0x58] sm:$0xff]  ;;  %v53_v36 = vld [vmem:[#allocation2 + $0x50] sm:$0xff] }
  0x23   :  { %127 = vmatpush1.msra.mxu1 %v43_v6  ;;  %v52_v38 = vld [vmem:[#allocation2 + $0x48] sm:$0xff]  ;;  %v51_v39 = vld [vmem:[#allocation2 + $0x40] sm:$0xff]  ;;  %v50_v40 = vld [vmem:[#allocation2 + $0x38] sm:$0xff] }
  0x24   :  { %452 = vmatmul.mubr.msk.f32.vlgmr.msra.gmra.mxu1 %vm92_vm0, %v619_v7  ;;  %220 = vmatprep.subr.mxu1 %v64_v25  ;;  %v49_v41 = vld [vmem:[#allocation2 + $0x30] sm:$0xff]  ;;  %v78_v63 = vld [vmem:[#allocation4 + $0x48] sm:$0xff]  ;;  %v77_v1 = vld [vmem:[#allocation4 + $0x40] sm:$0xff] }
  0x25   :  { %268 = vmatprep.mubr.f32.mxu1 %v585_v0  ;;  %221 = vmatpush1.msra.mxu1 %v63_v26  ;;  %v68_v49 = vld [vmem:[#allocation2 + $0xb1] ss:$8 sm:$0x3]  ;;  %v74_v4 = vld [vmem:[#allocation4 + $0x28] sm:$0xff]  ;;  %v73_v6 = vld [vmem:[#allocation4 + $0x20] sm:$0xff] }
  0x26   :  { %222 = vmatprep.subr.mxu1 %v62_v27  ;;  %v191_v50 = vrot.slane %v68_v49, %v84_v10  ;;  %v195_v54 = vrot.slane %v68_v49, %v88_v16  ;;  %v79_v62 = vld [vmem:[#allocation4 + $0x50] sm:$0xff]  ;;  %v76_v2 = vld [vmem:[#allocation4 + $0x38] sm:$0xff]  ;;  %v70_v9 = vld [vmem:[#allocation4 + $0x8] sm:$0xff] }
  0x27   :  { %223 = vmatpush1.msra.mxu1 %v61_v28  ;;  %475 = vmatpush3.msra.mxu0 %v79_v62  ;;  %v75_v3 = vld [vmem:[#allocation4 + $0x30] sm:$0xff]  ;;  %v69_v10 = vld [vmem:[#allocation4] sm:$0xff] }
  0x28   :  { %224 = vmatprep.subr.mxu1 %v60_v29  ;;  %476 = vmatprep.subr.mxu0 %v585_v0  ;;  %v71_v8 = vld [vmem:[#allocation4 + $0x10] sm:$0xff] }
  0x29   :  { %225 = vmatpush1.msra.mxu1 %v59_v30  ;;  %477 = vmatpush3.msra.mxu0 %v78_v63 }
  0x2a   :  { %226 = vmatprep.subr.mxu1 %v58_v31  ;;  %478 = vmatprep.subr.mxu0 %v585_v0 }
  0x2b   :  { %227 = vmatpush1.msra.mxu1 %v57_v32  ;;  %479 = vmatpush3.msra.mxu0 %v77_v1 }
  0x2c   :  { %228 = vmatprep.subr.mxu1 %v56_v33  ;;  %481 = vmatmul.mubr.msk.f32.vlgmr.msra.gmra.mxu0 %vm92_vm0, %v619_v7  ;;  %v72_v7 = vld [vmem:[#allocation4 + $0x18] sm:$0xff] }
  0x2d   :  { %229 = vmatpush1.msra.mxu1 %v55_v34  ;;  %483 = vmatprep.subr.mxu0 %v585_v0 }
  0x2e   :  { %230 = vmatprep.subr.mxu1 %v54_v35  ;;  %484 = vmatpush3.msra.mxu0 %v76_v2 }
  0x2f   :  { %231 = vmatpush1.msra.mxu1 %v53_v36  ;;  %499 = vmatprep.mubr.msk.f32.mxu0 %vm587_vm2, %v585_v0 }
  0x30   :  { %232 = vmatprep.subr.mxu1 %v52_v38  ;;  %485 = vmatprep.subr.mxu0 %v585_v0 }
  0x31   :  { %233 = vmatpush1.msra.mxu1 %v51_v39  ;;  %486 = vmatpush3.msra.mxu0 %v75_v3 }
  0x32   :  { %234 = vmatprep.subr.mxu1 %v50_v40  ;;  %487 = vmatprep.subr.mxu0 %v585_v0 }
  0x33   :  { %235 = vmatpush1.msra.mxu1 %v49_v41  ;;  %488 = vmatpush3.msra.mxu0 %v74_v4 }
  0x34   :  { %489 = vmatprep.subr.mxu0 %v585_v0 }
  0x35   :  { %490 = vmatpush3.msra.mxu0 %v73_v6 }
  0x36   :  { %491 = vmatprep.subr.mxu0 %v585_v0 }
  0x37   :  { %492 = vmatpush3.msra.mxu0 %v72_v7 }
  0x38   :  { %493 = vmatprep.subr.mxu0 %v585_v0 }
  0x39   :  { %494 = vmatpush3.msra.mxu0 %v71_v8 }
  0x3a   :  { %495 = vmatprep.subr.mxu0 %v585_v0 }
  0x3b   :  { %496 = vmatpush3.msra.mxu0 %v70_v9 }
  0x3c   :  { %497 = vmatprep.subr.mxu0 %v585_v0 }
  0x3d   :  { %498 = vmatpush3.msra.mxu0 %v69_v10 }
  0xe4   :  { %v162_v13 = vpop.f32.mrf.mxu1 }
  0xe5   :  { %v163_v14 = vadd.f32 %v162_v13, %v85_v12 }
  0xe6   :  { %v164_v18 = vpop.f32.mrf.mxu1 }
  0xe7   :  { %v453_v15 = vmul.f32 -1.442695, %v163_v14  ;;  %v165_v19 = vadd.f32 %v164_v18, %v89_v17 }
  0xe9   :  { %511 = vpow2.f32 %v453_v15  ;;  %v454_v42 = vmul.f32 -1.442695, %v165_v19 }
  0xea   :  { %513 = vtanh.f32 %v165_v19 }
  0xec   :  { %v361_v17 = vpop.f32.mrf.mxu0 }
  0xee   :  { %v482_v18 = vpop.f32.mrf.mxu0 }
  0xf6   :  { %v512_v20 = vpop.eup %511 }
  0xf7   :  { %v170_v21 = vadd.f32 1.0, %v512_v20  ;;  %v514_v22 = vpop.eup %513  ;;  %v460_v20 = vld [vmem:[#allocation4 + $0x58] ss:$0 sm:$0xff] }
  0xf9   :  { %515 = vrcp.f32 %v170_v21 }
 0x106   :  { %v516_v23 = vpop.eup %515 }
 0x107   :  { %v180_v24 = vmul.f32 %v516_v23, %v514_v22 }
 0x109   :  { %517 = vtanh.f32 %v180_v24 }
 0x10a   :  { %519 = vpow2.f32 %v454_v42 }
 0x116   :  { %v518_v37 = vpop.eup %517 }
 0x117   :  { %183 = vrot.lane.b32.xlu0 %v518_v37, %s586_s0  ;;  %v520_v43 = vpop.eup %519 }
 0x118   :  { %v177_v44 = vadd.f32 1.0, %v520_v43 }
 0x11a   :  { %521 = vrcp.f32 %v177_v44 }
 0x127   :  { %v522_v45 = vpop.eup %521 }
 0x189   :  { %v184_v46 = vpop.permute.xlu0 %183 }
 0x18a   :  { %v186_v47 = vmul.f32 %v522_v45, %v184_v46 }
 0x18c   :  { %199 = vrot.lane.b32.xlu0 %v186_v47, %s586_s0 }
 0x1fe   :  { %v200_v48 = vpop.permute.xlu0 %199 }
 0x1ff   :  { %455 = vmatmul.mubr.msk.f32.vlgmr.msra.gmra.mxu1 %vm201_vm1, %v200_v48 }
 0x2bf   :  { %v270_v51 = vpop.f32.mrf.mxu1 }
 0x2c0   :  { %v271_v52 = vadd.f32 %v270_v51, %v191_v50 }
 0x2c1   :  { %v272_v55 = vpop.f32.mrf.mxu1 }
 0x2c2   :  { %v456_v53 = vmul.f32 -1.442695, %v271_v52  ;;  %v273_v56 = vadd.f32 %v272_v55, %v195_v54 }
 0x2c4   :  { %523 = vpow2.f32 %v456_v53  ;;  %v457_v11 = vmul.f32 -1.442695, %v273_v56 }
 0x2c5   :  { %525 = vtanh.f32 %v273_v56 }
 0x2d1   :  { %v524_v57 = vpop.eup %523 }
 0x2d2   :  { %v278_v58 = vadd.f32 1.0, %v524_v57  ;;  %v526_v59 = vpop.eup %525 }
 0x2d4   :  { %527 = vrcp.f32 %v278_v58 }
 0x2e1   :  { %v528_v60 = vpop.eup %527 }
 0x2e2   :  { %v288_v61 = vmul.f32 %v528_v60, %v526_v59 }
 0x2e4   :  { %529 = vtanh.f32 %v288_v61 }
 0x2e5   :  { %531 = vpow2.f32 %v457_v11 }
 0x2f1   :  { %v530_v5 = vpop.eup %529 }
 0x2f2   :  { %291 = vrot.lane.b32.xlu1 %v530_v5, %s586_s0  ;;  %v532_v12 = vpop.eup %531 }
 0x2f3   :  { %v285_v13 = vadd.f32 1.0, %v532_v12 }
 0x2f5   :  { %533 = vrcp.f32 %v285_v13 }
 0x302   :  { %v534_v14 = vpop.eup %533 }
 0x364   :  { %v292_v15 = vpop.permute.xlu1 %291 }
 0x365   :  { %v294_v16 = vmul.f32 %v534_v14, %v292_v15 }
 0x367   :  { %366 = vrot.lane.b32.xlu1 %v294_v16, %s586_s0 }
 0x3d9   :  { %v367_v19 = vpop.permute.xlu1 %366 }
 0x3da   :  { %500 = vmatmul.mubr.msk.f32.vlgmr.msra.gmra.mxu0 %vm201_vm1, %v367_v19 }
 0x49a   :  { %v436_v21 = vpop.f32.mrf.mxu0 }
 0x49b   :  { %v437_v22 = vadd.f32 %v436_v21, %v361_v17 }
 0x49c   :  { %v501_v0 = vpop.f32.mrf.mxu0 }
 0x49d   :  { %v444_v23 = vadd.f32 %v460_v20, %v437_v22 }
 0x49f   :  { %445 = vst [vmem:[%s662_s3] sm:$0xff] %v444_v23 }
 0x4a0   :  { %450 = vsyncpa [#allocation3], 1 }
 0x4a1   :  { %451 = vsyncpa [#allocation5], 1 }

</bundles_post_ra>
